<compile_context>
chip_gen: v5e
topology: v5e:2x2
jax: 0.10.0
libtpu: 0.0.40
codegen_flags: <defaults>
</compile_context>

<pallas_src>
import functools

import jax
import jax.numpy as jnp
from jax.experimental import pallas as pl
from jax.experimental.pallas import tpu as pltpu


def _round_up(x, m):
    return ((x + m - 1) // m) * m


# ----------------------------- kernel ---------------------------------------


def _mlp_kernel(x_ref, w1_ref, b1_ref, w2_ref, b2_ref, w3_ref, b3_ref, o_ref):
    x = x_ref[...]                                              # (tile, input_dim)

    # Layer 1: Linear + ReLU (f32 accumulation on the MXU).
    h1 = jnp.dot(x, w1_ref[...], preferred_element_type=jnp.float32) + b1_ref[...]
    h1 = jnp.maximum(h1, 0.0)
    if h1.dtype != w2_ref.dtype:        # only emitted on the opt-in bf16 path
        h1 = h1.astype(w2_ref.dtype)

    # Layer 2: Linear + ReLU.
    h2 = jnp.dot(h1, w2_ref[...], preferred_element_type=jnp.float32) + b2_ref[...]
    h2 = jnp.maximum(h2, 0.0)
    if h2.dtype != w3_ref.dtype:
        h2 = h2.astype(w3_ref.dtype)

    # Layer 3: Linear (score head).  w3/b3 are lane-padded to 128 so the MXU
    # matmul stays (tile, 128); only the real output_dim columns are stored
    # (narrow HBM writeback; the masked store of 2 lanes is trivially cheap).
    out = jnp.dot(h2, w3_ref[...], preferred_element_type=jnp.float32) + b3_ref[...]
    o_ref[...] = out[:, : o_ref.shape[-1]].astype(o_ref.dtype)


# ----------------------------- params ---------------------------------------


def init_params(key, input_dim=4, hidden_dim=64, output_dim=2):
    """nn.Linear-style U(-1/sqrt(fan_in), +1/sqrt(fan_in)) init.
    Weights stored pre-transposed: (in_features, out_features)."""
    def linear(k, fan_in, fan_out):
        kw, kb = jax.random.split(k)
        bound = 1.0 / jnp.sqrt(fan_in)
        w = jax.random.uniform(kw, (fan_in, fan_out), jnp.float32, -bound, bound)
        b = jax.random.uniform(kb, (1, fan_out), jnp.float32, -bound, bound)
        return w, b

    k1, k2, k3 = jax.random.split(key, 3)
    w1, b1 = linear(k1, input_dim, hidden_dim)
    w2, b2 = linear(k2, hidden_dim, hidden_dim)
    w3, b3 = linear(k3, hidden_dim, output_dim)
    return (w1, b1, w2, b2, w3, b3)


def prepare_params(params, use_bf16=False):
    """One-time padding of hidden/output dims to lane width (128) plus optional
    bf16 weight cast.  Hoisted out of the per-call hot path.  Zero padding is
    exact: relu(0)=0 and zero rows/cols contribute nothing; the kernel only
    stores the real output columns."""
    w1, b1, w2, b2, w3, b3 = params
    input_dim, hidden_dim = w1.shape
    output_dim = w3.shape[1]
    hid_p = _round_up(hidden_dim, 128)
    out_p = _round_up(output_dim, 128)

    w1p = jnp.pad(w1, ((0, 0), (0, hid_p - hidden_dim)))
    b1p = jnp.pad(b1, ((0, 0), (0, hid_p - hidden_dim)))
    w2p = jnp.pad(w2, ((0, hid_p - hidden_dim), (0, hid_p - hidden_dim)))
    b2p = jnp.pad(b2, ((0, 0), (0, hid_p - hidden_dim)))
    w3p = jnp.pad(w3, ((0, hid_p - hidden_dim), (0, out_p - output_dim)))
    b3p = jnp.pad(b3, ((0, 0), (0, out_p - output_dim)))

    if use_bf16:
        # v6e/v7x only: feed bf16 to the MXU (f32 accumulation stays).  Keep
        # off on v5e (no bf16 VPU) and for strict 1e-5 correctness checks.
        w1p = w1p.astype(jnp.bfloat16)
        w2p = w2p.astype(jnp.bfloat16)
        w3p = w3p.astype(jnp.bfloat16)

    return dict(w1=w1p, b1=b1p, w2=w2p, b2=b2p, w3=w3p, b3=b3p,
                input_dim=input_dim, output_dim=output_dim)


# ----------------------------- wrapper ---------------------------------------


def _broadcast_spec(shape, single_buffer):
    # Constant index_map -> block fetched once, resident across all grid steps.
    if single_buffer:
        return pl.BlockSpec(shape, lambda i: (0, 0), pipeline_mode=pl.Buffered(1))
    return pl.BlockSpec(shape, lambda i: (0, 0))


def _run(x, p, tile, output_dim, single_buffer_weights):
    n, input_dim = x.shape
    hid_p = p["w1"].shape[1]
    out_p = p["w3"].shape[1]
    wspec = functools.partial(_broadcast_spec, single_buffer=single_buffer_weights)

    return pl.pallas_call(
        _mlp_kernel,
        out_shape=jax.ShapeDtypeStruct((n, output_dim), jnp.float32),
        grid_spec=pltpu.PrefetchScalarGridSpec(
            num_scalar_prefetch=0,
            grid=(pl.cdiv(n, tile),),
            in_specs=[
                # x tile: K=4 left lane-sparse on purpose (padding K would 32x
                # the input HBM traffic for ~0 MXU gain).
                pl.BlockSpec((tile, input_dim), lambda i: (i, 0)),
                wspec((input_dim, hid_p)),     # w1
                wspec((1, hid_p)),             # b1
                wspec((hid_p, hid_p)),         # w2
                wspec((1, hid_p)),             # b2
                wspec((hid_p, out_p)),         # w3 (lane-padded for the MXU)
                wspec((1, out_p)),             # b3
            ],
            # Narrow output: block last dim == full array dim (output_dim).
            out_specs=pl.BlockSpec((tile, output_dim), lambda i: (i, 0)),
        ),
        compiler_params=pltpu.CompilerParams(
            dimension_semantics=("parallel",),   # megacore sharding on v7x
        ),
    )(x, p["w1"], p["b1"], p["w2"], p["b2"], p["w3"], p["b3"])


def score_matching_denoising_forward(noisy_features, prepared, *, batch_tile=4096):
    """noisy_features: (n, input_dim) float32.  prepared: prepare_params(...).
    Returns (n, output_dim) float32."""
    n = noisy_features.shape[0]
    output_dim = prepared["output_dim"]

    x = noisy_features
    if prepared["w1"].dtype == jnp.bfloat16:
        x = x.astype(jnp.bfloat16)

    # Tile selection: biggest tile up to batch_tile (per-grid-step overhead of
    # ~0.35us dominates at small tiles); no input padding — Pallas masks the
    # partial last block's write and each output row depends only on its own
    # input row.  For large single-step batches, split into >=2 steps so the
    # "parallel" grid axis can shard across v7x's two TensorCores.
    tile = min(batch_tile, _round_up(max(n, 1), 8))
    if pl.cdiv(n, tile) == 1 and n > 1024:
        tile = _round_up(pl.cdiv(n, 2), 8)

    try:
        return _run(x, prepared, tile, output_dim, single_buffer_weights=True)
    except Exception:
        # Fallback for jax versions without BlockSpec(pipeline_mode=...):
        # default double-buffered weight blocks (~130 KB extra VMEM, harmless).
        return _run(x, prepared, tile, output_dim, single_buffer_weights=False)


def reference_forward(noisy_features, params):
    w1, b1, w2, b2, w3, b3 = params
    h1 = jnp.maximum(noisy_features @ w1 + b1, 0.0)
    h2 = jnp.maximum(h1 @ w2 + b2, 0.0)
    return h2 @ w3 + b3


# ----------------------------- main ------------------------------------------


if __name__ == "__main__":
    key = jax.random.PRNGKey(0)
    k_params, k_x1, k_x2 = jax.random.split(key, 3)

    input_dim, hidden_dim, output_dim = 4, 64, 2
    raw_params = init_params(k_params, input_dim, hidden_dim, output_dim)
    prepared = prepare_params(raw_params)        # padding hoisted out of hot path

    # Small batch: single grid step.
    n_small = 16
    x_small = jax.random.normal(k_x1, (n_small, input_dim), jnp.float32)
    out_small = jax.block_until_ready(
        score_matching_denoising_forward(x_small, prepared))
    ref_small = reference_forward(x_small, raw_params)
    assert out_small.shape == (n_small, output_dim)
    assert jnp.allclose(out_small, ref_small, atol=1e-5, rtol=1e-5)

    # Ragged batch with a small tile: exercises multi-step grid + masked
    # partial last block (no wrapper-side x padding).
    n_ragged = 1037
    x_ragged = jax.random.normal(k_x2, (n_ragged, input_dim), jnp.float32)
    out_ragged = jax.block_until_ready(
        score_matching_denoising_forward(x_ragged, prepared, batch_tile=512))
    ref_ragged = reference_forward(x_ragged, raw_params)
    assert out_ragged.shape == (n_ragged, output_dim)
    assert jnp.allclose(out_ragged, ref_ragged, atol=1e-5, rtol=1e-5)

    print("KERNEL_OK")
</pallas_src>

<mosaic_0001>
module attributes {stable_mosaic.version = 11 : i64} {
  func.func @_mlp_kernel(%arg0: i32, %arg1: memref<16x4xf32, #tpu.memory_space<vmem>>, %arg2: memref<4x128xf32, #tpu.memory_space<vmem>>, %arg3: memref<1x128xf32, #tpu.memory_space<vmem>>, %arg4: memref<128x128xf32, #tpu.memory_space<vmem>>, %arg5: memref<1x128xf32, #tpu.memory_space<vmem>>, %arg6: memref<128x128xf32, #tpu.memory_space<vmem>>, %arg7: memref<1x128xf32, #tpu.memory_space<vmem>>, %arg8: memref<16x2xf32, #tpu.memory_space<vmem>>) attributes {dimension_semantics = [#tpu.dimension_semantics<parallel>], iteration_bounds = array<i64: 1>, scalar_prefetch = 0 : i64, scratch_operands = 0 : i64, tpu.core_type = #tpu.core_type<tc>, window_params = [{transform_indices = @transform_0, window_bounds = array<i64: 16, 4>}, {pipeline_mode = #tpu.pipeline_mode<synchronous>, transform_indices = @transform_1, window_bounds = array<i64: 4, 128>}, {pipeline_mode = #tpu.pipeline_mode<synchronous>, transform_indices = @transform_2, window_bounds = array<i64: 1, 128>}, {pipeline_mode = #tpu.pipeline_mode<synchronous>, transform_indices = @transform_3, window_bounds = array<i64: 128, 128>}, {pipeline_mode = #tpu.pipeline_mode<synchronous>, transform_indices = @transform_4, window_bounds = array<i64: 1, 128>}, {pipeline_mode = #tpu.pipeline_mode<synchronous>, transform_indices = @transform_5, window_bounds = array<i64: 128, 128>}, {pipeline_mode = #tpu.pipeline_mode<synchronous>, transform_indices = @transform_6, window_bounds = array<i64: 1, 128>}, {transform_indices = @transform_7, window_bounds = array<i64: 16, 2>}]} {
    %c0 = arith.constant 0 : index
    %c0_0 = arith.constant 0 : index
    %0 = vector.load %arg1[%c0, %c0_0] : memref<16x4xf32, #tpu.memory_space<vmem>>, vector<16x4xf32>
    %c0_1 = arith.constant 0 : index
    %c0_2 = arith.constant 0 : index
    %1 = vector.load %arg2[%c0_1, %c0_2] : memref<4x128xf32, #tpu.memory_space<vmem>>, vector<4x128xf32>
    %cst = arith.constant dense<0.000000e+00> : vector<16x128xf32>
    %2 = tpu.matmul %0, %1, %cst {dimension_numbers = #tpu.dot_dimension_numbers<[1], [0], [0], [1], [0, 0, 1, 1], [], []>} : vector<16x4xf32>, vector<4x128xf32>, vector<16x128xf32> -> vector<16x128xf32>
    %c0_3 = arith.constant 0 : index
    %c0_4 = arith.constant 0 : index
    %3 = vector.load %arg3[%c0_3, %c0_4] : memref<1x128xf32, #tpu.memory_space<vmem>>, vector<1x128xf32>
    %4 = vector.broadcast %3 : vector<1x128xf32> to vector<16x128xf32>
    %5 = arith.addf %2, %4 : vector<16x128xf32>
    %cst_5 = arith.constant 0.000000e+00 : f32
    %6 = vector.broadcast %cst_5 : f32 to vector<16x128xf32>
    %7 = arith.maximumf %5, %6 : vector<16x128xf32>
    %c0_6 = arith.constant 0 : index
    %c0_7 = arith.constant 0 : index
    %8 = vector.load %arg4[%c0_6, %c0_7] : memref<128x128xf32, #tpu.memory_space<vmem>>, vector<128x128xf32>
    %cst_8 = arith.constant dense<0.000000e+00> : vector<16x128xf32>
    %9 = tpu.matmul %7, %8, %cst_8 {dimension_numbers = #tpu.dot_dimension_numbers<[1], [0], [0], [1], [0, 0, 1, 1], [], []>} : vector<16x128xf32>, vector<128x128xf32>, vector<16x128xf32> -> vector<16x128xf32>
    %c0_9 = arith.constant 0 : index
    %c0_10 = arith.constant 0 : index
    %10 = vector.load %arg5[%c0_9, %c0_10] : memref<1x128xf32, #tpu.memory_space<vmem>>, vector<1x128xf32>
    %11 = vector.broadcast %10 : vector<1x128xf32> to vector<16x128xf32>
    %12 = arith.addf %9, %11 : vector<16x128xf32>
    %cst_11 = arith.constant 0.000000e+00 : f32
    %13 = vector.broadcast %cst_11 : f32 to vector<16x128xf32>
    %14 = arith.maximumf %12, %13 : vector<16x128xf32>
    %c0_12 = arith.constant 0 : index
    %c0_13 = arith.constant 0 : index
    %15 = vector.load %arg6[%c0_12, %c0_13] : memref<128x128xf32, #tpu.memory_space<vmem>>, vector<128x128xf32>
    %cst_14 = arith.constant dense<0.000000e+00> : vector<16x128xf32>
    %16 = tpu.matmul %14, %15, %cst_14 {dimension_numbers = #tpu.dot_dimension_numbers<[1], [0], [0], [1], [0, 0, 1, 1], [], []>} : vector<16x128xf32>, vector<128x128xf32>, vector<16x128xf32> -> vector<16x128xf32>
    %c0_15 = arith.constant 0 : index
    %c0_16 = arith.constant 0 : index
    %17 = vector.load %arg7[%c0_15, %c0_16] : memref<1x128xf32, #tpu.memory_space<vmem>>, vector<1x128xf32>
    %18 = vector.broadcast %17 : vector<1x128xf32> to vector<16x128xf32>
    %19 = arith.addf %16, %18 : vector<16x128xf32>
    %20 = vector.extract_strided_slice %19 {offsets = [0, 0], sizes = [16, 2], strides = [1, 1]} : vector<16x128xf32> to vector<16x2xf32>
    %c0_17 = arith.constant 0 : index
    %c0_18 = arith.constant 0 : index
    %21 = vector.load %arg8[%c0_17, %c0_18] : memref<16x2xf32, #tpu.memory_space<vmem>>, vector<16x2xf32>
    tpu.vector_store %arg8[%c0_17, %c0_18], %20 {strides = array<i32>} : memref<16x2xf32, #tpu.memory_space<vmem>>, vector<16x2xf32>,
    return
  }
  func.func @transform_0(%arg0: i32) -> (i32, i32) {
    %c0_i32 = arith.constant 0 : i32
    %c0_i32_0 = arith.constant 0 : i32
    return %arg0, %c0_i32 : i32, i32
  }
  func.func @transform_1(%arg0: i32) -> (i32, i32) {
    %c0_i32 = arith.constant 0 : i32
    %c0_i32_0 = arith.constant 0 : i32
    %c0_i32_1 = arith.constant 0 : i32
    return %c0_i32, %c0_i32_0 : i32, i32
  }
  func.func @transform_2(%arg0: i32) -> (i32, i32) {
    %c0_i32 = arith.constant 0 : i32
    %c0_i32_0 = arith.constant 0 : i32
    %c0_i32_1 = arith.constant 0 : i32
    return %c0_i32, %c0_i32_0 : i32, i32
  }
  func.func @transform_3(%arg0: i32) -> (i32, i32) {
    %c0_i32 = arith.constant 0 : i32
    %c0_i32_0 = arith.constant 0 : i32
    %c0_i32_1 = arith.constant 0 : i32
    return %c0_i32, %c0_i32_0 : i32, i32
  }
  func.func @transform_4(%arg0: i32) -> (i32, i32) {
    %c0_i32 = arith.constant 0 : i32
    %c0_i32_0 = arith.constant 0 : i32
    %c0_i32_1 = arith.constant 0 : i32
    return %c0_i32, %c0_i32_0 : i32, i32
  }
  func.func @transform_5(%arg0: i32) -> (i32, i32) {
    %c0_i32 = arith.constant 0 : i32
    %c0_i32_0 = arith.constant 0 : i32
    %c0_i32_1 = arith.constant 0 : i32
    return %c0_i32, %c0_i32_0 : i32, i32
  }
  func.func @transform_6(%arg0: i32) -> (i32, i32) {
    %c0_i32 = arith.constant 0 : i32
    %c0_i32_0 = arith.constant 0 : i32
    %c0_i32_1 = arith.constant 0 : i32
    return %c0_i32, %c0_i32_0 : i32, i32
  }
  func.func @transform_7(%arg0: i32) -> (i32, i32) {
    %c0_i32 = arith.constant 0 : i32
    %c0_i32_0 = arith.constant 0 : i32
    return %arg0, %c0_i32 : i32, i32
  }
}

module attributes {stable_mosaic.version = 11 : i64} {
  func.func @_mlp_kernel(%arg0: i32, %arg1: memref<16x4xf32, #tpu.memory_space<vmem>>, %arg2: memref<4x128xf32, #tpu.memory_space<vmem>>, %arg3: memref<1x128xf32, #tpu.memory_space<vmem>>, %arg4: memref<128x128xf32, #tpu.memory_space<vmem>>, %arg5: memref<1x128xf32, #tpu.memory_space<vmem>>, %arg6: memref<128x128xf32, #tpu.memory_space<vmem>>, %arg7: memref<1x128xf32, #tpu.memory_space<vmem>>, %arg8: memref<16x2xf32, #tpu.memory_space<vmem>>) attributes {dimension_semantics = [#tpu.dimension_semantics<parallel>], iteration_bounds = array<i64: 1>, scalar_prefetch = 0 : i64, scratch_operands = 0 : i64, tpu.core_type = #tpu.core_type<tc>, window_params = [{transform_indices = @transform_0, window_bounds = array<i64: 16, 4>}, {pipeline_mode = #tpu.pipeline_mode<synchronous>, transform_indices = @transform_1, window_bounds = array<i64: 4, 128>}, {pipeline_mode = #tpu.pipeline_mode<synchronous>, transform_indices = @transform_2, window_bounds = array<i64: 1, 128>}, {pipeline_mode = #tpu.pipeline_mode<synchronous>, transform_indices = @transform_3, window_bounds = array<i64: 128, 128>}, {pipeline_mode = #tpu.pipeline_mode<synchronous>, transform_indices = @transform_4, window_bounds = array<i64: 1, 128>}, {pipeline_mode = #tpu.pipeline_mode<synchronous>, transform_indices = @transform_5, window_bounds = array<i64: 128, 128>}, {pipeline_mode = #tpu.pipeline_mode<synchronous>, transform_indices = @transform_6, window_bounds = array<i64: 1, 128>}, {transform_indices = @transform_7, window_bounds = array<i64: 16, 2>}]} {
    %c0 = arith.constant 0 : index
    %c0_0 = arith.constant 0 : index
    %0 = vector.load %arg1[%c0, %c0_0] : memref<16x4xf32, #tpu.memory_space<vmem>>, vector<16x4xf32>
    %c0_1 = arith.constant 0 : index
    %c0_2 = arith.constant 0 : index
    %1 = vector.load %arg2[%c0_1, %c0_2] : memref<4x128xf32, #tpu.memory_space<vmem>>, vector<4x128xf32>
    %cst = arith.constant dense<0.000000e+00> : vector<16x128xf32>
    %2 = tpu.matmul %0, %1, %cst {dimension_numbers = #tpu.dot_dimension_numbers<[1], [0], [0], [1], [0, 0, 1, 1], [], []>} : vector<16x4xf32>, vector<4x128xf32>, vector<16x128xf32> -> vector<16x128xf32>
    %c0_3 = arith.constant 0 : index
    %c0_4 = arith.constant 0 : index
    %3 = vector.load %arg3[%c0_3, %c0_4] : memref<1x128xf32, #tpu.memory_space<vmem>>, vector<1x128xf32>
    %4 = vector.broadcast %3 : vector<1x128xf32> to vector<16x128xf32>
    %5 = arith.addf %2, %4 : vector<16x128xf32>
    %cst_5 = arith.constant 0.000000e+00 : f32
    %6 = vector.broadcast %cst_5 : f32 to vector<16x128xf32>
    %7 = arith.maximumf %5, %6 : vector<16x128xf32>
    %c0_6 = arith.constant 0 : index
    %c0_7 = arith.constant 0 : index
    %8 = vector.load %arg4[%c0_6, %c0_7] : memref<128x128xf32, #tpu.memory_space<vmem>>, vector<128x128xf32>
    %cst_8 = arith.constant dense<0.000000e+00> : vector<16x128xf32>
    %9 = tpu.matmul %7, %8, %cst_8 {dimension_numbers = #tpu.dot_dimension_numbers<[1], [0], [0], [1], [0, 0, 1, 1], [], []>} : vector<16x128xf32>, vector<128x128xf32>, vector<16x128xf32> -> vector<16x128xf32>
    %c0_9 = arith.constant 0 : index
    %c0_10 = arith.constant 0 : index
    %10 = vector.load %arg5[%c0_9, %c0_10] : memref<1x128xf32, #tpu.memory_space<vmem>>, vector<1x128xf32>
    %11 = vector.broadcast %10 : vector<1x128xf32> to vector<16x128xf32>
    %12 = arith.addf %9, %11 : vector<16x128xf32>
    %cst_11 = arith.constant 0.000000e+00 : f32
    %13 = vector.broadcast %cst_11 : f32 to vector<16x128xf32>
    %14 = arith.maximumf %12, %13 : vector<16x128xf32>
    %c0_12 = arith.constant 0 : index
    %c0_13 = arith.constant 0 : index
    %15 = vector.load %arg6[%c0_12, %c0_13] : memref<128x128xf32, #tpu.memory_space<vmem>>, vector<128x128xf32>
    %cst_14 = arith.constant dense<0.000000e+00> : vector<16x128xf32>
    %16 = tpu.matmul %14, %15, %cst_14 {dimension_numbers = #tpu.dot_dimension_numbers<[1], [0], [0], [1], [0, 0, 1, 1], [], []>} : vector<16x128xf32>, vector<128x128xf32>, vector<16x128xf32> -> vector<16x128xf32>
    %c0_15 = arith.constant 0 : index
    %c0_16 = arith.constant 0 : index
    %17 = vector.load %arg7[%c0_15, %c0_16] : memref<1x128xf32, #tpu.memory_space<vmem>>, vector<1x128xf32>
    %18 = vector.broadcast %17 : vector<1x128xf32> to vector<16x128xf32>
    %19 = arith.addf %16, %18 : vector<16x128xf32>
    %20 = vector.extract_strided_slice %19 {offsets = [0, 0], sizes = [16, 2], strides = [1, 1]} : vector<16x128xf32> to vector<16x2xf32>
    %c0_17 = arith.constant 0 : index
    %c0_18 = arith.constant 0 : index
    %21 = vector.load %arg8[%c0_17, %c0_18] : memref<16x2xf32, #tpu.memory_space<vmem>>, vector<16x2xf32>
    tpu.vector_store %arg8[%c0_17, %c0_18], %20 {strides = array<i32>} : memref<16x2xf32, #tpu.memory_space<vmem>>, vector<16x2xf32>,
    return
  }
  func.func @transform_0(%arg0: i32) -> (i32, i32) {
    %c0_i32 = arith.constant 0 : i32
    %c0_i32_0 = arith.constant 0 : i32
    return %arg0, %c0_i32 : i32, i32
  }
  func.func @transform_1(%arg0: i32) -> (i32, i32) {
    %c0_i32 = arith.constant 0 : i32
    %c0_i32_0 = arith.constant 0 : i32
    %c0_i32_1 = arith.constant 0 : i32
    return %c0_i32, %c0_i32_0 : i32, i32
  }
  func.func @transform_2(%arg0: i32) -> (i32, i32) {
    %c0_i32 = arith.constant 0 : i32
    %c0_i32_0 = arith.constant 0 : i32
    %c0_i32_1 = arith.constant 0 : i32
    return %c0_i32, %c0_i32_0 : i32, i32
  }
  func.func @transform_3(%arg0: i32) -> (i32, i32) {
    %c0_i32 = arith.constant 0 : i32
    %c0_i32_0 = arith.constant 0 : i32
    %c0_i32_1 = arith.constant 0 : i32
    return %c0_i32, %c0_i32_0 : i32, i32
  }
  func.func @transform_4(%arg0: i32) -> (i32, i32) {
    %c0_i32 = arith.constant 0 : i32
    %c0_i32_0 = arith.constant 0 : i32
    %c0_i32_1 = arith.constant 0 : i32
    return %c0_i32, %c0_i32_0 : i32, i32
  }
  func.func @transform_5(%arg0: i32) -> (i32, i32) {
    %c0_i32 = arith.constant 0 : i32
    %c0_i32_0 = arith.constant 0 : i32
    %c0_i32_1 = arith.constant 0 : i32
    return %c0_i32, %c0_i32_0 : i32, i32
  }
  func.func @transform_6(%arg0: i32) -> (i32, i32) {
    %c0_i32 = arith.constant 0 : i32
    %c0_i32_0 = arith.constant 0 : i32
    %c0_i32_1 = arith.constant 0 : i32
    return %c0_i32, %c0_i32_0 : i32, i32
  }
  func.func @transform_7(%arg0: i32) -> (i32, i32) {
    %c0_i32 = arith.constant 0 : i32
    %c0_i32_0 = arith.constant 0 : i32
    return %arg0, %c0_i32 : i32, i32
  }
}

</mosaic_0001>

<bundles_post_ra>
// kernel: tpu_custom_call.1
= control target key start
LH: loop header
LB: loop body
LE: loop exit
PB: predicated region body
PF: predicated region fallthrough
CT: control target
= control target key end

     0   :  { %12 = vsyncpa [#allocation3], 0  ;;  %s368_s0 = inlined_call_operand.vmem [shape: f32[16,4], index: 0, kind: input, shape index: {}]   ;;  %s369_s1 = inlined_call_operand.vmem [shape: f32[4,128], index: 1, kind: input, shape index: {}]   ;;  %s370_s2 = inlined_call_operand.vmem [shape: f32[1,128], index: 2, kind: input, shape index: {}]   ;;  %s371_s3 = inlined_call_operand.hbm [shape: f32[128,128], index: 3, kind: input, shape index: {}]   ;;  %s372_s4 = inlined_call_operand.vmem [shape: f32[1,128], index: 4, kind: input, shape index: {}]   ;;  %s373_s5 = inlined_call_operand.hbm [shape: f32[128,128], index: 5, kind: input, shape index: {}]   ;;  %s374_s6 = inlined_call_operand.vmem [shape: f32[1,128], index: 6, kind: input, shape index: {}]   ;;  %s375_s7 = inlined_call_operand.vmem [shape: f32[16,2], index: 7, kind: output, shape index: {}]  }
   0x1   :  { %s24_s26 = sshll.u32 %s371_s3, 4  ;;  %s25_s26 = int_to_ptr.hbm [resolvable:$true] %s24_s26 }
   0x2   :  { %13 = vsyncpa [#allocation5], 0  ;;  %s292_s27 = smov [#allocation2]   ;;  %s39_s8 = sshll.u32 %s373_s5, 4  ;;  %s40_s8 = int_to_ptr.hbm [resolvable:$true] %s39_s8 }
   0x3   :  { %s26_s28 = sshll.u32 %s292_s27, 4  ;;  %s293_s9 = smov 128   ;;  %s27_s28 = int_to_ptr.vmem [resolvable:$true] %s26_s28 }
   0x4   :  { %s294_s10 = smov 8   ;;  %s295_s11 = smov [#allocation4]  }
   0x5   :  { %32 = dma.hbm_to_vmem [thread:$0]  %s25_s26, 2048, %s27_s28, [#allocation3], %s293_s9, %s293_s9, %s294_s10  }
   0x6   :  { %s41_s12 = sshll.u32 %s295_s11, 4  ;;  %s42_s12 = int_to_ptr.vmem [resolvable:$true] %s41_s12 }
   0x7   :  { %47 = dma.hbm_to_vmem [thread:$0]  %s40_s8, 2048, %s42_s12, [#allocation5], %s293_s9, %s293_s9, %s294_s10  }
   0x8   :  { %288 = dma.done.wait [#allocation3], 2048  }
   0x9   :  { %289 = vsyncadd [#allocation3], 4294965248 }
   0xa   :  { %290 = dma.done.wait [#allocation5], 2048  }
   0xb   :  { %291 = vsyncadd [#allocation5], 4294965248  ;;  %vm72_vm0 = vcmask 1043456   ;;  %vm65_vm1 = vcmask 31744   ;;  %v60_v0 = vld [vmem:[%s369_s1] sm:$0xf] }
   0xc   :  { %v58_v1 = vld [vmem:[%s368_s0] sm:$0xff]  ;;  %198 = vmatpush.msk.msra.mxu0 %vm72_vm0, %v60_v0  ;;  %v116_v2 = vld [vmem:[#allocation2 + $0x78] sm:$0xff]  ;;  %v115_v3 = vld [vmem:[#allocation2 + $0x70] sm:$0xff]  ;;  %vm189_vm2 = vcmask 15360  }
   0xd   :  { %199 = vmatmul.msk.f32.vlgmr.msra.gmra.mxu0 %vm65_vm1, %v58_v1  ;;  %121 = vmatpush.msra.mxu1 %v116_v2  ;;  %v114_v4 = vld [vmem:[#allocation2 + $0x68] sm:$0xff]  ;;  %v113_v5 = vld [vmem:[#allocation2 + $0x60] sm:$0xff]  ;;  %v112_v7 = vld [vmem:[#allocation2 + $0x58] sm:$0xff] }
   0xe   :  { %201 = vmatpush.msra.mxu3 %v116_v2  ;;  %v59_v6 = vld [vmem:[%s368_s0 + $0x8] sm:$0xff]  ;;  %v111_v8 = vld [vmem:[#allocation2 + $0x50] sm:$0xff]  ;;  %v109_v10 = vld [vmem:[#allocation2 + $0x40] sm:$0xff] }
   0xf   :  { %122 = vmatpush.msra.mxu1 %v115_v3  ;;  %v110_v9 = vld [vmem:[#allocation2 + $0x48] sm:$0xff]  ;;  %v108_v11 = vld [vmem:[#allocation2 + $0x38] sm:$0xff]  ;;  %v107_v12 = vld [vmem:[#allocation2 + $0x30] sm:$0xff] }
  0x10   :  { %202 = vmatpush.msra.mxu3 %v115_v3  ;;  %v106_v13 = vld [vmem:[#allocation2 + $0x28] sm:$0xff]  ;;  %v105_v14 = vld [vmem:[#allocation2 + $0x20] sm:$0xff]  ;;  %v104_v15 = vld [vmem:[#allocation2 + $0x18] sm:$0xff] }
  0x11   :  { %123 = vmatpush.msra.mxu1 %v114_v4  ;;  %v103_v16 = vld [vmem:[#allocation2 + $0x10] sm:$0xff]  ;;  %v102_v17 = vld [vmem:[#allocation2 + $0x8] sm:$0xff]  ;;  %v101_v18 = vld [vmem:[#allocation2] sm:$0xff] }
  0x12   :  { %203 = vmatpush.msra.mxu3 %v114_v4  ;;  %v161_v19 = vld [vmem:[#allocation4 + $0x78] sm:$0xff]  ;;  %v160_v20 = vld [vmem:[#allocation4 + $0x70] sm:$0xff]  ;;  %v159_v21 = vld [vmem:[#allocation4 + $0x68] sm:$0xff] }
  0x13   :  { %124 = vmatpush.msra.mxu1 %v113_v5  ;;  %166 = vmatpush.msrb.mxu0 %v161_v19  ;;  %v158_v22 = vld [vmem:[#allocation4 + $0x60] sm:$0xff]  ;;  %v157_v23 = vld [vmem:[#allocation4 + $0x58] sm:$0xff]  ;;  %v156_v24 = vld [vmem:[#allocation4 + $0x50] sm:$0xff] }
  0x14   :  { %204 = vmatpush.msra.mxu3 %v113_v5  ;;  %217 = vmatpush.msra.mxu2 %v161_v19  ;;  %v155_v25 = vld [vmem:[#allocation4 + $0x48] sm:$0xff]  ;;  %v154_v26 = vld [vmem:[#allocation4 + $0x40] sm:$0xff]  ;;  %v153_v27 = vld [vmem:[#allocation4 + $0x38] sm:$0xff] }
  0x15   :  { %200 = vmatmul.msk.f32.gmra.mxu0 %vm65_vm1, %v59_v6  ;;  %125 = vmatpush.msra.mxu1 %v112_v7  ;;  %v237_v28 = vld [vmem:[%s370_s2] ss:$0 sm:$0xff]  ;;  %v152_v29 = vld [vmem:[#allocation4 + $0x30] sm:$0xff]  ;;  %v151_v30 = vld [vmem:[#allocation4 + $0x28] sm:$0xff] }
  0x16   :  { %205 = vmatpush.msra.mxu3 %v112_v7  ;;  %167 = vmatpush.msrb.mxu0 %v160_v20  ;;  %v150_v33 = vld [vmem:[#allocation4 + $0x20] sm:$0xff]  ;;  %v149_v35 = vld [vmem:[#allocation4 + $0x18] sm:$0xff]  ;;  %v148_v39 = vld [vmem:[#allocation4 + $0x10] sm:$0xff] }
  0x17   :  { %126 = vmatpush.msra.mxu1 %v111_v8  ;;  %218 = vmatpush.msra.mxu2 %v160_v20  ;;  %v147_v40 = vld [vmem:[#allocation4 + $0x8] sm:$0xff]  ;;  %v146_v41 = vld [vmem:[#allocation4] sm:$0xff] }
  0x18   :  { %206 = vmatpush.msra.mxu3 %v111_v8  ;;  %168 = vmatpush.msrb.mxu0 %v159_v21  ;;  %v238_v42 = vld [vmem:[%s372_s4] ss:$0 sm:$0xff] }
  0x19   :  { %127 = vmatpush.msra.mxu1 %v110_v9  ;;  %219 = vmatpush.msra.mxu2 %v159_v21  ;;  %v239_v49 = vld [vmem:[%s374_s6] ss:$0 sm:$0xff] }
  0x1a   :  { %207 = vmatpush.msra.mxu3 %v110_v9  ;;  %169 = vmatpush.msrb.mxu0 %v158_v22 }
  0x1b   :  { %128 = vmatpush.msra.mxu1 %v109_v10  ;;  %220 = vmatpush.msra.mxu2 %v158_v22 }
  0x1c   :  { %208 = vmatpush.msra.mxu3 %v109_v10  ;;  %170 = vmatpush.msrb.mxu0 %v157_v23 }
  0x1d   :  { %129 = vmatpush.msra.mxu1 %v108_v11  ;;  %221 = vmatpush.msra.mxu2 %v157_v23 }
  0x1e   :  { %209 = vmatpush.msra.mxu3 %v108_v11  ;;  %171 = vmatpush.msrb.mxu0 %v156_v24 }
  0x1f   :  { %130 = vmatpush.msra.mxu1 %v107_v12  ;;  %222 = vmatpush.msra.mxu2 %v156_v24 }
  0x20   :  { %210 = vmatpush.msra.mxu3 %v107_v12  ;;  %172 = vmatpush.msrb.mxu0 %v155_v25 }
  0x21   :  { %131 = vmatpush.msra.mxu1 %v106_v13  ;;  %223 = vmatpush.msra.mxu2 %v155_v25 }
  0x22   :  { %211 = vmatpush.msra.mxu3 %v106_v13  ;;  %173 = vmatpush.msrb.mxu0 %v154_v26 }
  0x23   :  { %132 = vmatpush.msra.mxu1 %v105_v14  ;;  %224 = vmatpush.msra.mxu2 %v154_v26 }
  0x24   :  { %212 = vmatpush.msra.mxu3 %v105_v14  ;;  %174 = vmatpush.msrb.mxu0 %v153_v27 }
  0x25   :  { %133 = vmatpush.msra.mxu1 %v104_v15  ;;  %225 = vmatpush.msra.mxu2 %v153_v27 }
  0x26   :  { %213 = vmatpush.msra.mxu3 %v104_v15  ;;  %175 = vmatpush.msrb.mxu0 %v152_v29 }
  0x27   :  { %134 = vmatpush.msra.mxu1 %v103_v16  ;;  %226 = vmatpush.msra.mxu2 %v152_v29 }
  0x28   :  { %214 = vmatpush.msra.mxu3 %v103_v16  ;;  %176 = vmatpush.msrb.mxu0 %v151_v30 }
  0x29   :  { %135 = vmatpush.msra.mxu1 %v102_v17  ;;  %227 = vmatpush.msra.mxu2 %v151_v30 }
  0x2a   :  { %215 = vmatpush.msra.mxu3 %v102_v17  ;;  %177 = vmatpush.msrb.mxu0 %v150_v33 }
  0x2b   :  { %136 = vmatpush.msra.mxu1 %v101_v18  ;;  %228 = vmatpush.msra.mxu2 %v150_v33 }
  0x2c   :  { %216 = vmatpush.msra.mxu3 %v101_v18  ;;  %178 = vmatpush.msrb.mxu0 %v149_v35 }
  0x2d   :  { %229 = vmatpush.msra.mxu2 %v149_v35 }
  0x2e   :  { %179 = vmatpush.msrb.mxu0 %v148_v39 }
  0x2f   :  { %230 = vmatpush.msra.mxu2 %v148_v39 }
  0x30   :  { %180 = vmatpush.msrb.mxu0 %v147_v40 }
  0x31   :  { %231 = vmatpush.msra.mxu2 %v147_v40 }
  0x32   :  { %181 = vmatpush.msrb.mxu0 %v146_v41 }
  0x33   :  { %232 = vmatpush.msra.mxu2 %v146_v41 }
  0x8a   :  { %v93_v31 = vpop.f32.mrf.mxu0 }
  0x8b   :  { %v94_v32 = vadd.f32 %v237_v28, %v93_v31 }
  0x8d   :  { %v99_v34 = vmax.f32 %v94_v32, 0.0 }
  0x8f   :  { %137 = vmatmul.f32.vlgmr.msra.gmra.mxu1 %v99_v34 }
  0x92   :  { %v96_v36 = vpop.f32.mrf.mxu0 }
  0x93   :  { %v97_v37 = vadd.f32 %v237_v28, %v96_v36 }
  0x95   :  { %v100_v38 = vmax.f32 %v97_v37, 0.0 }
  0x97   :  { %140 = vmatmul.f32.vlgmr.msra.gmra.mxu3 %v100_v38 }
 0x10c   :  { %v138_v43 = vpop.f32.mrf.mxu1 }
 0x10d   :  { %v139_v44 = vadd.f32 %v238_v42, %v138_v43 }
 0x10f   :  { %v144_v45 = vmax.f32 %v139_v44, 0.0 }
 0x111   :  { %182 = vmatmul.f32.vlgmr.msrb.gmra.mxu0 %v144_v45 }
 0x11a   :  { %v141_v46 = vpop.f32.mrf.mxu3 }
 0x11b   :  { %v142_v47 = vadd.f32 %v238_v42, %v141_v46 }
 0x11d   :  { %v145_v48 = vmax.f32 %v142_v47, 0.0 }
 0x11f   :  { %185 = vmatmul.f32.vlgmr.msra.gmra.mxu2 %v145_v48 }
 0x18e   :  { %v183_v50 = vpop.f32.mrf.mxu0 }
 0x18f   :  { %v184_v51 = vadd.f32 %v239_v49, %v183_v50 }
 0x191   :  { %190 = vst.msk [vmem:[%s375_s7] sm:$0xff] %vm189_vm2, %v184_v51 }
 0x1a2   :  { %v186_v52 = vpop.f32.mrf.mxu2 }
 0x1a3   :  { %v187_v53 = vadd.f32 %v239_v49, %v186_v52 }
 0x1a5   :  { %191 = vst.msk [vmem:[%s375_s7 + $0x8] sm:$0xff] %vm189_vm2, %v187_v53 }
 0x1a6   :  { %196 = vsyncpa [#allocation3], 1 }
 0x1a7   :  { %197 = vsyncpa [#allocation5], 1 }

// kernel: tpu_custom_call.1
= control target key start
LH: loop header
LB: loop body
LE: loop exit
PB: predicated region body
PF: predicated region fallthrough
CT: control target
= control target key end

     0   :  { %12 = vsyncpa [#allocation3], 0  ;;  %s368_s0 = inlined_call_operand.vmem [shape: f32[16,4], index: 0, kind: input, shape index: {}]   ;;  %s369_s1 = inlined_call_operand.vmem [shape: f32[4,128], index: 1, kind: input, shape index: {}]   ;;  %s370_s2 = inlined_call_operand.vmem [shape: f32[1,128], index: 2, kind: input, shape index: {}]   ;;  %s371_s3 = inlined_call_operand.hbm [shape: f32[128,128], index: 3, kind: input, shape index: {}]   ;;  %s372_s4 = inlined_call_operand.vmem [shape: f32[1,128], index: 4, kind: input, shape index: {}]   ;;  %s373_s5 = inlined_call_operand.hbm [shape: f32[128,128], index: 5, kind: input, shape index: {}]   ;;  %s374_s6 = inlined_call_operand.vmem [shape: f32[1,128], index: 6, kind: input, shape index: {}]   ;;  %s375_s7 = inlined_call_operand.vmem [shape: f32[16,2], index: 7, kind: output, shape index: {}]  }
   0x1   :  { %s24_s26 = sshll.u32 %s371_s3, 4  ;;  %s25_s26 = int_to_ptr.hbm [resolvable:$true] %s24_s26 }
   0x2   :  { %13 = vsyncpa [#allocation5], 0  ;;  %s292_s27 = smov [#allocation2]   ;;  %s39_s8 = sshll.u32 %s373_s5, 4  ;;  %s40_s8 = int_to_ptr.hbm [resolvable:$true] %s39_s8 }
   0x3   :  { %s26_s28 = sshll.u32 %s292_s27, 4  ;;  %s293_s9 = smov 128   ;;  %s27_s28 = int_to_ptr.vmem [resolvable:$true] %s26_s28 }
   0x4   :  { %s294_s10 = smov 8   ;;  %s295_s11 = smov [#allocation4]  }
   0x5   :  { %32 = dma.hbm_to_vmem [thread:$0]  %s25_s26, 2048, %s27_s28, [#allocation3], %s293_s9, %s293_s9, %s294_s10  }
   0x6   :  { %s41_s12 = sshll.u32 %s295_s11, 4  ;;  %s42_s12 = int_to_ptr.vmem [resolvable:$true] %s41_s12 }
   0x7   :  { %47 = dma.hbm_to_vmem [thread:$0]  %s40_s8, 2048, %s42_s12, [#allocation5], %s293_s9, %s293_s9, %s294_s10  }
   0x8   :  { %288 = dma.done.wait [#allocation3], 2048  }
   0x9   :  { %289 = vsyncadd [#allocation3], 4294965248 }
   0xa   :  { %290 = dma.done.wait [#allocation5], 2048  }
   0xb   :  { %291 = vsyncadd [#allocation5], 4294965248  ;;  %vm72_vm0 = vcmask 1043456   ;;  %vm65_vm1 = vcmask 31744   ;;  %v60_v0 = vld [vmem:[%s369_s1] sm:$0xf] }
   0xc   :  { %v58_v1 = vld [vmem:[%s368_s0] sm:$0xff]  ;;  %198 = vmatpush.msk.msra.mxu0 %vm72_vm0, %v60_v0  ;;  %v116_v2 = vld [vmem:[#allocation2 + $0x78] sm:$0xff]  ;;  %v115_v3 = vld [vmem:[#allocation2 + $0x70] sm:$0xff]  ;;  %vm189_vm2 = vcmask 15360  }
   0xd   :  { %199 = vmatmul.msk.f32.vlgmr.msra.gmra.mxu0 %vm65_vm1, %v58_v1  ;;  %121 = vmatpush.msra.mxu1 %v116_v2  ;;  %v114_v4 = vld [vmem:[#allocation2 + $0x68] sm:$0xff]  ;;  %v113_v5 = vld [vmem:[#allocation2 + $0x60] sm:$0xff]  ;;  %v112_v7 = vld [vmem:[#allocation2 + $0x58] sm:$0xff] }
   0xe   :  { %201 = vmatpush.msra.mxu3 %v116_v2  ;;  %v59_v6 = vld [vmem:[%s368_s0 + $0x8] sm:$0xff]  ;;  %v111_v8 = vld [vmem:[#allocation2 + $0x50] sm:$0xff]  ;;  %v109_v10 = vld [vmem:[#allocation2 + $0x40] sm:$0xff] }
   0xf   :  { %122 = vmatpush.msra.mxu1 %v115_v3  ;;  %v110_v9 = vld [vmem:[#allocation2 + $0x48] sm:$0xff]  ;;  %v108_v11 = vld [vmem:[#allocation2 + $0x38] sm:$0xff]  ;;  %v107_v12 = vld [vmem:[#allocation2 + $0x30] sm:$0xff] }
  0x10   :  { %202 = vmatpush.msra.mxu3 %v115_v3  ;;  %v106_v13 = vld [vmem:[#allocation2 + $0x28] sm:$0xff]  ;;  %v105_v14 = vld [vmem:[#allocation2 + $0x20] sm:$0xff]  ;;  %v104_v15 = vld [vmem:[#allocation2 + $0x18] sm:$0xff] }
  0x11   :  { %123 = vmatpush.msra.mxu1 %v114_v4  ;;  %v103_v16 = vld [vmem:[#allocation2 + $0x10] sm:$0xff]  ;;  %v102_v17 = vld [vmem:[#allocation2 + $0x8] sm:$0xff]  ;;  %v101_v18 = vld [vmem:[#allocation2] sm:$0xff] }
  0x12   :  { %203 = vmatpush.msra.mxu3 %v114_v4  ;;  %v161_v19 = vld [vmem:[#allocation4 + $0x78] sm:$0xff]  ;;  %v160_v20 = vld [vmem:[#allocation4 + $0x70] sm:$0xff]  ;;  %v159_v21 = vld [vmem:[#allocation4 + $0x68] sm:$0xff] }
  0x13   :  { %124 = vmatpush.msra.mxu1 %v113_v5  ;;  %166 = vmatpush.msrb.mxu0 %v161_v19  ;;  %v158_v22 = vld [vmem:[#allocation4 + $0x60] sm:$0xff]  ;;  %v157_v23 = vld [vmem:[#allocation4 + $0x58] sm:$0xff]  ;;  %v156_v24 = vld [vmem:[#allocation4 + $0x50] sm:$0xff] }
  0x14   :  { %204 = vmatpush.msra.mxu3 %v113_v5  ;;  %217 = vmatpush.msra.mxu2 %v161_v19  ;;  %v155_v25 = vld [vmem:[#allocation4 + $0x48] sm:$0xff]  ;;  %v154_v26 = vld [vmem:[#allocation4 + $0x40] sm:$0xff]  ;;  %v153_v27 = vld [vmem:[#allocation4 + $0x38] sm:$0xff] }
  0x15   :  { %200 = vmatmul.msk.f32.gmra.mxu0 %vm65_vm1, %v59_v6  ;;  %125 = vmatpush.msra.mxu1 %v112_v7  ;;  %v237_v28 = vld [vmem:[%s370_s2] ss:$0 sm:$0xff]  ;;  %v152_v29 = vld [vmem:[#allocation4 + $0x30] sm:$0xff]  ;;  %v151_v30 = vld [vmem:[#allocation4 + $0x28] sm:$0xff] }
  0x16   :  { %205 = vmatpush.msra.mxu3 %v112_v7  ;;  %167 = vmatpush.msrb.mxu0 %v160_v20  ;;  %v150_v33 = vld [vmem:[#allocation4 + $0x20] sm:$0xff]  ;;  %v149_v35 = vld [vmem:[#allocation4 + $0x18] sm:$0xff]  ;;  %v148_v39 = vld [vmem:[#allocation4 + $0x10] sm:$0xff] }
  0x17   :  { %126 = vmatpush.msra.mxu1 %v111_v8  ;;  %218 = vmatpush.msra.mxu2 %v160_v20  ;;  %v147_v40 = vld [vmem:[#allocation4 + $0x8] sm:$0xff]  ;;  %v146_v41 = vld [vmem:[#allocation4] sm:$0xff] }
  0x18   :  { %206 = vmatpush.msra.mxu3 %v111_v8  ;;  %168 = vmatpush.msrb.mxu0 %v159_v21  ;;  %v238_v42 = vld [vmem:[%s372_s4] ss:$0 sm:$0xff] }
  0x19   :  { %127 = vmatpush.msra.mxu1 %v110_v9  ;;  %219 = vmatpush.msra.mxu2 %v159_v21  ;;  %v239_v49 = vld [vmem:[%s374_s6] ss:$0 sm:$0xff] }
  0x1a   :  { %207 = vmatpush.msra.mxu3 %v110_v9  ;;  %169 = vmatpush.msrb.mxu0 %v158_v22 }
  0x1b   :  { %128 = vmatpush.msra.mxu1 %v109_v10  ;;  %220 = vmatpush.msra.mxu2 %v158_v22 }
  0x1c   :  { %208 = vmatpush.msra.mxu3 %v109_v10  ;;  %170 = vmatpush.msrb.mxu0 %v157_v23 }
  0x1d   :  { %129 = vmatpush.msra.mxu1 %v108_v11  ;;  %221 = vmatpush.msra.mxu2 %v157_v23 }
  0x1e   :  { %209 = vmatpush.msra.mxu3 %v108_v11  ;;  %171 = vmatpush.msrb.mxu0 %v156_v24 }
  0x1f   :  { %130 = vmatpush.msra.mxu1 %v107_v12  ;;  %222 = vmatpush.msra.mxu2 %v156_v24 }
  0x20   :  { %210 = vmatpush.msra.mxu3 %v107_v12  ;;  %172 = vmatpush.msrb.mxu0 %v155_v25 }
  0x21   :  { %131 = vmatpush.msra.mxu1 %v106_v13  ;;  %223 = vmatpush.msra.mxu2 %v155_v25 }
  0x22   :  { %211 = vmatpush.msra.mxu3 %v106_v13  ;;  %173 = vmatpush.msrb.mxu0 %v154_v26 }
  0x23   :  { %132 = vmatpush.msra.mxu1 %v105_v14  ;;  %224 = vmatpush.msra.mxu2 %v154_v26 }
  0x24   :  { %212 = vmatpush.msra.mxu3 %v105_v14  ;;  %174 = vmatpush.msrb.mxu0 %v153_v27 }
  0x25   :  { %133 = vmatpush.msra.mxu1 %v104_v15  ;;  %225 = vmatpush.msra.mxu2 %v153_v27 }
  0x26   :  { %213 = vmatpush.msra.mxu3 %v104_v15  ;;  %175 = vmatpush.msrb.mxu0 %v152_v29 }
  0x27   :  { %134 = vmatpush.msra.mxu1 %v103_v16  ;;  %226 = vmatpush.msra.mxu2 %v152_v29 }
  0x28   :  { %214 = vmatpush.msra.mxu3 %v103_v16  ;;  %176 = vmatpush.msrb.mxu0 %v151_v30 }
  0x29   :  { %135 = vmatpush.msra.mxu1 %v102_v17  ;;  %227 = vmatpush.msra.mxu2 %v151_v30 }
  0x2a   :  { %215 = vmatpush.msra.mxu3 %v102_v17  ;;  %177 = vmatpush.msrb.mxu0 %v150_v33 }
  0x2b   :  { %136 = vmatpush.msra.mxu1 %v101_v18  ;;  %228 = vmatpush.msra.mxu2 %v150_v33 }
  0x2c   :  { %216 = vmatpush.msra.mxu3 %v101_v18  ;;  %178 = vmatpush.msrb.mxu0 %v149_v35 }
  0x2d   :  { %229 = vmatpush.msra.mxu2 %v149_v35 }
  0x2e   :  { %179 = vmatpush.msrb.mxu0 %v148_v39 }
  0x2f   :  { %230 = vmatpush.msra.mxu2 %v148_v39 }
  0x30   :  { %180 = vmatpush.msrb.mxu0 %v147_v40 }
  0x31   :  { %231 = vmatpush.msra.mxu2 %v147_v40 }
  0x32   :  { %181 = vmatpush.msrb.mxu0 %v146_v41 }
  0x33   :  { %232 = vmatpush.msra.mxu2 %v146_v41 }
  0x8a   :  { %v93_v31 = vpop.f32.mrf.mxu0 }
  0x8b   :  { %v94_v32 = vadd.f32 %v237_v28, %v93_v31 }
  0x8d   :  { %v99_v34 = vmax.f32 %v94_v32, 0.0 }
  0x8f   :  { %137 = vmatmul.f32.vlgmr.msra.gmra.mxu1 %v99_v34 }
  0x92   :  { %v96_v36 = vpop.f32.mrf.mxu0 }
  0x93   :  { %v97_v37 = vadd.f32 %v237_v28, %v96_v36 }
  0x95   :  { %v100_v38 = vmax.f32 %v97_v37, 0.0 }
  0x97   :  { %140 = vmatmul.f32.vlgmr.msra.gmra.mxu3 %v100_v38 }
 0x10c   :  { %v138_v43 = vpop.f32.mrf.mxu1 }
 0x10d   :  { %v139_v44 = vadd.f32 %v238_v42, %v138_v43 }
 0x10f   :  { %v144_v45 = vmax.f32 %v139_v44, 0.0 }
 0x111   :  { %182 = vmatmul.f32.vlgmr.msrb.gmra.mxu0 %v144_v45 }
 0x11a   :  { %v141_v46 = vpop.f32.mrf.mxu3 }
 0x11b   :  { %v142_v47 = vadd.f32 %v238_v42, %v141_v46 }
 0x11d   :  { %v145_v48 = vmax.f32 %v142_v47, 0.0 }
 0x11f   :  { %185 = vmatmul.f32.vlgmr.msra.gmra.mxu2 %v145_v48 }
 0x18e   :  { %v183_v50 = vpop.f32.mrf.mxu0 }
 0x18f   :  { %v184_v51 = vadd.f32 %v239_v49, %v183_v50 }
 0x191   :  { %190 = vst.msk [vmem:[%s375_s7] sm:$0xff] %vm189_vm2, %v184_v51 }
 0x1a2   :  { %v186_v52 = vpop.f32.mrf.mxu2 }
 0x1a3   :  { %v187_v53 = vadd.f32 %v239_v49, %v186_v52 }
 0x1a5   :  { %191 = vst.msk [vmem:[%s375_s7 + $0x8] sm:$0xff] %vm189_vm2, %v187_v53 }
 0x1a6   :  { %196 = vsyncpa [#allocation3], 1 }
 0x1a7   :  { %197 = vsyncpa [#allocation5], 1 }

</bundles_post_ra>
